<compile_context>
chip_gen: v6e
topology: v6e:2x2x1
jax: 0.10.0
libtpu: 0.0.40
codegen_flags: <defaults>
</compile_context>

<pallas_src>
import functools
import math

import jax
import jax.numpy as jnp
from jax.experimental import pallas as pl
from jax.experimental.pallas import tpu as pltpu


def _round_up(x, m):
    return (x + m - 1) // m * m


def _vmem_info():
    """(physical VMEM bytes, usable budget with headroom) — generation-aware."""
    try:
        cap = int(pltpu.get_tpu_info().vmem_capacity_bytes)
    except Exception:
        cap = 64 * 1024 * 1024  # assume the smallest (v7x) if query unavailable
    # Leave ~20% headroom for compiler-internal scratch.
    return cap, max(int(cap * 0.78), 24 * 1024 * 1024)


def _weight_spec(block_shape, index_map, buffers):
    """BlockSpec for a streamed weight slab, optionally >2-deep buffered."""
    if buffers > 2 and hasattr(pl, "Buffered"):
        try:
            return pl.BlockSpec(block_shape, index_map,
                                pipeline_mode=pl.Buffered(buffers))
        except TypeError:
            pass
    return pl.BlockSpec(block_shape, index_map)


def gemma_mlp_kernel(x_ref, gu_w_ref, down_w_ref, o_ref, acc_ref, *, ti):
    # Grid: (m, i).  m tiles rows of x / out; i streams the intermediate dim.
    i = pl.program_id(1)

    x = x_ref[...]                                   # (tm, H)

    # Fused gate|up projection: single (tm,H)@(H,2*ti) MXU matmul per step.
    gu = jnp.dot(x, gu_w_ref[0], preferred_element_type=jnp.float32)
    gate = gu[:, :ti]                                # (tm, ti)
    up = gu[:, ti:]                                  # (tm, ti)

    # Exact GELU (matches torch F.gelu default, approximate='none'):
    #   0.5 * g * (1 + erf(g / sqrt(2)))
    inv_sqrt2 = jnp.float32(1.0 / math.sqrt(2.0))
    h = (0.5 * gate * (1.0 + jax.lax.erf(gate * inv_sqrt2))) * up

    # Partial down projection for this I-slice.
    partial_sum = jnp.dot(h.astype(down_w_ref.dtype), down_w_ref[0],
                          preferred_element_type=jnp.float32)

    # First step stores directly (no zero-fill + add pass), later steps add.
    @pl.when(i == 0)
    def _():
        acc_ref[...] = partial_sum

    @pl.when(i > 0)
    def _():
        acc_ref[...] += partial_sum

    @pl.when(i == pl.num_programs(1) - 1)
    def _():
        o_ref[...] = acc_ref[...].astype(o_ref.dtype)


def gemma_mlp(x, gate_w, up_w, down_w, *, tm=None, ti=None, weight_buffers=None):
    """x: (M, H); gate_w/up_w: (H, I); down_w: (I, H). Returns (M, H).

    For best performance feed bf16 x / weights (f32 accumulation is kept
    inside the kernel).  Weight re-layout (fuse + per-block contiguity) is
    done here per call; cache it upstream for repeated forwards.
    """
    M, H = x.shape
    I = gate_w.shape[1]
    assert up_w.shape == (H, I) and down_w.shape == (I, H)

    cap, budget = _vmem_info()
    bx = jnp.dtype(x.dtype).itemsize
    bw = jnp.dtype(gate_w.dtype).itemsize

    # Intermediate-dim tile: >=512 lanes (full 256-wide MXU / >=1 KiB DMA
    # chunks) for real shapes, full-I rounded to 128 lanes for tiny shapes.
    if ti is None:
        if I <= 512:
            ti = _round_up(I, 128)
        else:
            ti = next((c for c in (2048, 1024, 512) if I % c == 0), 512)
    assert ti % 128 == 0, "ti must be a multiple of 128 lanes"

    # Row tile: never shrink for ragged M — pad rows instead.
    if tm is None:
        tm = 512 if M >= 512 else _round_up(M, 8)
    tm = _round_up(tm, 8)

    if weight_buffers is None:
        weight_buffers = 3 if tm <= 128 else 2   # deeper buffering for decode

    def _live_vmem(tm_, ti_, wb_):
        return (2 * tm_ * H * bx           # x tile (double-buffered)
                + wb_ * 2 * H * ti_ * bw   # fused [gate|up] weight slab
                + wb_ * ti_ * H * bw       # down-proj weight slab
                + 2 * tm_ * H * bx         # output tile (double-buffered)
                + tm_ * H * 4)             # f32 accumulator scratch

    # Shrink (buffer depth -> ti -> tm) until we fit the per-generation budget.
    while _live_vmem(tm, ti, weight_buffers) > budget:
        if weight_buffers > 2:
            weight_buffers = 2
        elif ti > 512:
            ti //= 2
        elif tm > 128:
            tm = max(128, _round_up(tm // 2, 8))
        elif ti > 128:
            ti //= 2
        else:
            break

    M_pad = _round_up(M, tm)
    I_pad = _round_up(I, ti)
    n_m = M_pad // tm
    n_i = I_pad // ti
    if n_m * n_i < 4:
        weight_buffers = 2   # no point in deep buffering a 1-3 step grid

    # ---- pad activations / weights (zero rows & columns contribute zero). ---
    if M_pad != M:
        x = jnp.pad(x, ((0, M_pad - M), (0, 0)))
    gw, uw, dw = gate_w, up_w, down_w
    if I_pad != I:
        gw = jnp.pad(gw, ((0, 0), (0, I_pad - I)))
        uw = jnp.pad(uw, ((0, 0), (0, I_pad - I)))
        dw = jnp.pad(dw, ((0, I_pad - I), (0, 0)))

    # ---- fuse gate|up into per-I-block contiguous slabs. --------------------
    # (H, I_pad) -> (H, n_i, ti) -> concat -> (H, n_i, 2*ti) -> (n_i, H, 2*ti)
    gu_w = jnp.concatenate(
        [gw.reshape(H, n_i, ti), uw.reshape(H, n_i, ti)], axis=-1)
    gu_w = jnp.transpose(gu_w, (1, 0, 2))            # (n_i, H, 2*ti)
    dwb = dw.reshape(n_i, ti, H)                     # (n_i, ti, H)

    live = _live_vmem(tm, ti, weight_buffers)
    vmem_limit = int(min(cap, max(budget, int(live * 1.25))))

    # Advisory cost hint for XLA's scheduler.
    cost = pl.CostEstimate(
        flops=6 * M_pad * H * I_pad,                  # three (fused-as-two) matmuls
        transcendentals=M_pad * I_pad,                # erf per intermediate elem
        bytes_accessed=(M_pad * H * bx                # x
                        + n_m * 3 * H * I_pad * bw    # weights streamed per m-tile
                        + M_pad * H * bx),            # out
    )

    grid_spec = pltpu.PrefetchScalarGridSpec(
        num_scalar_prefetch=0,
        grid=(n_m, n_i),
        in_specs=[
            pl.BlockSpec((tm, H), lambda m, i: (m, 0)),                 # x rows
            _weight_spec((1, H, 2 * ti), lambda m, i: (i, 0, 0),
                         weight_buffers),                               # [gate|up]
            _weight_spec((1, ti, H), lambda m, i: (i, 0, 0),
                         weight_buffers),                               # down
        ],
        out_specs=pl.BlockSpec((tm, H), lambda m, i: (m, 0)),
        scratch_shapes=[pltpu.VMEM((tm, H), jnp.float32)],
    )

    out = pl.pallas_call(
        functools.partial(gemma_mlp_kernel, ti=ti),
        out_shape=jax.ShapeDtypeStruct((M_pad, H), x.dtype),
        grid_spec=grid_spec,
        compiler_params=pltpu.CompilerParams(
            dimension_semantics=("parallel", "arbitrary"),
            vmem_limit_bytes=vmem_limit,
        ),
        cost_estimate=cost,
    )(x, gu_w, dwb)

    return out[:M] if M_pad != M else out


def _ref_mlp(x2d, gate_w, up_w, down_w):
    g = x2d.astype(jnp.float32) @ gate_w.astype(jnp.float32)
    u = x2d.astype(jnp.float32) @ up_w.astype(jnp.float32)
    g = 0.5 * g * (1.0 + jax.lax.erf(g / jnp.sqrt(2.0)))
    return (g * u) @ down_w.astype(jnp.float32)


if __name__ == "__main__":
    # ---- Test 1: small shapes consistent with the module (single grid tile).
    # batch=2, seq=8, hidden=128, intermediate=256 (world_size=1: no sharding).
    batch, seq, hidden, intermediate = 2, 8, 128, 256
    M = batch * seq

    key = jax.random.PRNGKey(0)
    kx, kg, ku, kd = jax.random.split(key, 4)

    x = jax.random.normal(kx, (batch, seq, hidden), dtype=jnp.float32)
    # Torch-style (out, in) weights, deterministically initialized;
    # pre-transpose to (in, out) for the kernel's row-major matmuls.
    gate_w = (jax.random.normal(kg, (intermediate, hidden), jnp.float32) * 0.05).T
    up_w = (jax.random.normal(ku, (intermediate, hidden), jnp.float32) * 0.05).T
    down_w = (jax.random.normal(kd, (hidden, intermediate), jnp.float32) * 0.05).T

    x2d = x.reshape(M, hidden)
    out = gemma_mlp(x2d, gate_w, up_w, down_w).reshape(batch, seq, hidden)
    jax.block_until_ready(out)

    ref = _ref_mlp(x2d, gate_w, up_w, down_w).reshape(batch, seq, hidden)
    assert jnp.allclose(out, ref, atol=1e-4, rtol=1e-4), "mismatch (test 1)"

    # ---- Test 2: ragged M (row padding), streamed I (n_i=4), and the
    # decode-path Buffered(3) weight pipeline.  M=20 -> tm=24 (padded),
    # H=128, I=2048 with ti=512.
    M2, H2, I2 = 20, 128, 2048
    k2 = jax.random.split(jax.random.PRNGKey(1), 4)
    x2 = jax.random.normal(k2[0], (M2, H2), jnp.float32)
    gw2 = jax.random.normal(k2[1], (H2, I2), jnp.float32) * 0.05
    uw2 = jax.random.normal(k2[2], (H2, I2), jnp.float32) * 0.05
    dw2 = jax.random.normal(k2[3], (I2, H2), jnp.float32) * 0.05

    out2 = gemma_mlp(x2, gw2, uw2, dw2, ti=512)
    jax.block_until_ready(out2)
    assert out2.shape == (M2, H2)
    ref2 = _ref_mlp(x2, gw2, uw2, dw2)
    assert jnp.allclose(out2, ref2, atol=2e-4, rtol=2e-4), "mismatch (test 2)"

    print("KERNEL_OK")
</pallas_src>

<mosaic_0001>
module attributes {stable_mosaic.version = 11 : i64} {
  func.func @gemma_mlp_kernel(%arg0: i32, %arg1: i32, %arg2: memref<16x128xf32, #tpu.memory_space<vmem>>, %arg3: memref<1x128x512xf32, #tpu.memory_space<vmem>>, %arg4: memref<1x256x128xf32, #tpu.memory_space<vmem>>, %arg5: memref<16x128xf32, #tpu.memory_space<vmem>>, %arg6: memref<16x128xf32, #tpu.memory_space<vmem>>) attributes {dimension_semantics = [#tpu.dimension_semantics<parallel>, #tpu.dimension_semantics<arbitrary>], iteration_bounds = array<i64: 1, 1>, scalar_prefetch = 0 : i64, scratch_operands = 1 : i64, tpu.core_type = #tpu.core_type<tc>, window_params = [{transform_indices = @transform_0, window_bounds = array<i64: 16, 128>}, {transform_indices = @transform_1, window_bounds = array<i64: 1, 128, 512>}, {transform_indices = @transform_2, window_bounds = array<i64: 1, 256, 128>}, {transform_indices = @transform_3, window_bounds = array<i64: 16, 128>}]} {
    %c0 = arith.constant 0 : index
    %c0_0 = arith.constant 0 : index
    %0 = vector.load %arg2[%c0, %c0_0] : memref<16x128xf32, #tpu.memory_space<vmem>>, vector<16x128xf32>
    %c0_1 = arith.constant 0 : index
    %c0_2 = arith.constant 0 : index
    %c0_3 = arith.constant 0 : index
    %1 = vector.load %arg3[%c0_1, %c0_2, %c0_3] : memref<1x128x512xf32, #tpu.memory_space<vmem>>, vector<1x128x512xf32>
    %2 = vector.shape_cast %1 : vector<1x128x512xf32> to vector<128x512xf32>
    %cst = arith.constant dense<0.000000e+00> : vector<16x512xf32>
    %3 = tpu.matmul %0, %2, %cst {dimension_numbers = #tpu.dot_dimension_numbers<[1], [0], [0], [1], [0, 0, 1, 1], [], []>} : vector<16x128xf32>, vector<128x512xf32>, vector<16x512xf32> -> vector<16x512xf32>
    %4 = vector.extract_strided_slice %3 {offsets = [0, 0], sizes = [16, 256], strides = [1, 1]} : vector<16x512xf32> to vector<16x256xf32>
    %5 = vector.extract_strided_slice %3 {offsets = [0, 256], sizes = [16, 256], strides = [1, 1]} : vector<16x512xf32> to vector<16x256xf32>
    %cst_4 = arith.constant 5.000000e-01 : f32
    %6 = vector.broadcast %cst_4 : f32 to vector<16x256xf32>
    %7 = arith.mulf %6, %4 : vector<16x256xf32>
    %cst_5 = arith.constant 0.707106769 : f32
    %8 = vector.broadcast %cst_5 : f32 to vector<16x256xf32>
    %9 = arith.mulf %4, %8 : vector<16x256xf32>
    %10 = math.erf %9 : vector<16x256xf32>
    %cst_6 = arith.constant 1.000000e+00 : f32
    %11 = vector.broadcast %cst_6 : f32 to vector<16x256xf32>
    %12 = arith.addf %11, %10 : vector<16x256xf32>
    %13 = arith.mulf %7, %12 : vector<16x256xf32>
    %14 = arith.mulf %13, %5 : vector<16x256xf32>
    %c0_7 = arith.constant 0 : index
    %c0_8 = arith.constant 0 : index
    %c0_9 = arith.constant 0 : index
    %15 = vector.load %arg4[%c0_7, %c0_8, %c0_9] : memref<1x256x128xf32, #tpu.memory_space<vmem>>, vector<1x256x128xf32>
    %16 = vector.shape_cast %15 : vector<1x256x128xf32> to vector<256x128xf32>
    %cst_10 = arith.constant dense<0.000000e+00> : vector<16x128xf32>
    %17 = tpu.matmul %14, %16, %cst_10 {dimension_numbers = #tpu.dot_dimension_numbers<[1], [0], [0], [1], [0, 0, 1, 1], [], []>} : vector<16x256xf32>, vector<256x128xf32>, vector<16x128xf32> -> vector<16x128xf32>
    %c0_i32 = arith.constant 0 : i32
    %18 = arith.cmpi eq, %arg1, %c0_i32 : i32
    %19 = arith.extui %18 : i1 to i32
    %c0_i32_11 = arith.constant 0 : i32
    %20 = arith.cmpi ne, %19, %c0_i32_11 : i32
    scf.if %20 {
      %c0_16 = arith.constant 0 : index
      %c0_17 = arith.constant 0 : index
      %27 = vector.load %arg6[%c0_16, %c0_17] : memref<16x128xf32, #tpu.memory_space<vmem>>, vector<16x128xf32>
      tpu.vector_store %arg6[%c0_16, %c0_17], %17 {strides = array<i32>} : memref<16x128xf32, #tpu.memory_space<vmem>>, vector<16x128xf32>,
    } else {
    }
    %c0_i32_12 = arith.constant 0 : i32
    %21 = arith.cmpi sgt, %arg1, %c0_i32_12 : i32
    %22 = arith.extui %21 : i1 to i32
    %c0_i32_13 = arith.constant 0 : i32
    %23 = arith.cmpi ne, %22, %c0_i32_13 : i32
    scf.if %23 {
      %c0_16 = arith.constant 0 : index
      %c0_17 = arith.constant 0 : index
      %27 = vector.load %arg6[%c0_16, %c0_17] : memref<16x128xf32, #tpu.memory_space<vmem>>, vector<16x128xf32>
      %28 = arith.addf %27, %17 : vector<16x128xf32>
      %c0_18 = arith.constant 0 : index
      %c0_19 = arith.constant 0 : index
      %29 = vector.load %arg6[%c0_18, %c0_19] : memref<16x128xf32, #tpu.memory_space<vmem>>, vector<16x128xf32>
      tpu.vector_store %arg6[%c0_18, %c0_19], %28 {strides = array<i32>} : memref<16x128xf32, #tpu.memory_space<vmem>>, vector<16x128xf32>,
    } else {
    }
    %c0_i32_14 = arith.constant 0 : i32
    %24 = arith.cmpi eq, %arg1, %c0_i32_14 : i32
    %25 = arith.extui %24 : i1 to i32
    %c0_i32_15 = arith.constant 0 : i32
    %26 = arith.cmpi ne, %25, %c0_i32_15 : i32
    scf.if %26 {
      %c0_16 = arith.constant 0 : index
      %c0_17 = arith.constant 0 : index
      %27 = vector.load %arg6[%c0_16, %c0_17] : memref<16x128xf32, #tpu.memory_space<vmem>>, vector<16x128xf32>
      %c0_18 = arith.constant 0 : index
      %c0_19 = arith.constant 0 : index
      %28 = vector.load %arg5[%c0_18, %c0_19] : memref<16x128xf32, #tpu.memory_space<vmem>>, vector<16x128xf32>
      tpu.vector_store %arg5[%c0_18, %c0_19], %27 {strides = array<i32>} : memref<16x128xf32, #tpu.memory_space<vmem>>, vector<16x128xf32>,
    } else {
    }
    return
  }
  func.func @transform_0(%arg0: i32, %arg1: i32) -> (i32, i32) {
    %c0_i32 = arith.constant 0 : i32
    %c0_i32_0 = arith.constant 0 : i32
    return %arg0, %c0_i32 : i32, i32
  }
  func.func @transform_1(%arg0: i32, %arg1: i32) -> (i32, i32, i32) {
    %c0_i32 = arith.constant 0 : i32
    %c0_i32_0 = arith.constant 0 : i32
    %c0_i32_1 = arith.constant 0 : i32
    return %arg1, %c0_i32, %c0_i32_0 : i32, i32, i32
  }
  func.func @transform_2(%arg0: i32, %arg1: i32) -> (i32, i32, i32) {
    %c0_i32 = arith.constant 0 : i32
    %c0_i32_0 = arith.constant 0 : i32
    %c0_i32_1 = arith.constant 0 : i32
    return %arg1, %c0_i32, %c0_i32_0 : i32, i32, i32
  }
  func.func @transform_3(%arg0: i32, %arg1: i32) -> (i32, i32) {
    %c0_i32 = arith.constant 0 : i32
    %c0_i32_0 = arith.constant 0 : i32
    return %arg0, %c0_i32 : i32, i32
  }
}

</mosaic_0001>

<bundles_post_ra>
// kernel: tpu_custom_call.1
= control target key start
LH: loop header
LB: loop body
LE: loop exit
PB: predicated region body
PF: predicated region fallthrough
CT: control target
= control target key end

     0   :  { %8 = vsyncpa [#allocation4], 0  ;;  %s675_s0 = inlined_call_operand.hbm [shape: f32[16,128], index: 0, kind: input, shape index: {}]   ;;  %s676_s1 = inlined_call_operand.hbm [shape: f32[1,128,512], index: 1, kind: input, shape index: {}]   ;;  %s677_s2 = inlined_call_operand.hbm [shape: f32[1,256,128], index: 2, kind: input, shape index: {}]   ;;  %s678_s3 = inlined_call_operand.hbm [shape: f32[16,128], index: 3, kind: output, shape index: {}]  }
   0x1   :  { %9 = vsyncpa [#allocation7], 0 }
   0x2   :  { %10 = vsyncpa [#allocation5], 0  ;;  %s621_s12 = smov [#allocation6]  }
   0x3   :  { %s28_s13 = sshll.u32 %s621_s12, 4  ;;  %s29_s13 = int_to_ptr.vmem [resolvable:$true] %s28_s13 }
   0x4   :  { %s543_s14 = scalar_lea.vmem %s29_s13, 8192  ;;  %p548_p1 = scmp.lt.s32.totalorder %s29_s13, %s29_s13 }
   0x5   :  { %p544_p0 = scmp.ne.s32.totalorder %s29_s13, %s543_s14  ;;  %p549_p2 = scmp.lt.s32.totalorder %s543_s14, %s543_s14 }
   0x7   :  { %p550_p3 = por %p549_p2, %p548_p1 }
   0x9   :  { %p551_p4 = pnand %p550_p3, %p544_p0 }
   0xb   :  { %554 = shalt.err (!%p551_p4)
}
   0xc   :  { %s622_s15 = smov 512   ;;  %s623_s16 = smov 32  }
   0xd   :  { %34 = dma.hbm_to_vmem [thread:$0]  %s676_s1, 8192, %s29_s13, [#allocation7], %s622_s15, %s622_s15, %s623_s16  }
   0xe   :  { %s624_s19 = smov [#allocation3]  }
   0xf   :  { %s16_s20 = sshll.u32 %s624_s19, 4  ;;  %s17_s20 = int_to_ptr.vmem [resolvable:$true] %s16_s20 }
  0x10   :  { %s563_s21 = scalar_lea.vmem %s17_s20, 256  ;;  %p568_p6 = scmp.lt.s32.totalorder %s17_s20, %s17_s20 }
  0x11   :  { %p564_p5 = scmp.ne.s32.totalorder %s17_s20, %s563_s21  ;;  %p569_p7 = scmp.lt.s32.totalorder %s563_s21, %s563_s21 }
  0x13   :  { %p570_p8 = por %p569_p7, %p568_p6 }
  0x15   :  { %p571_p9 = pnand %p570_p8, %p564_p5 }
  0x17   :  { %574 = shalt.err (!%p571_p9)
}
  0x18   :  { %s625_s22 = smov 128   ;;  %s626_s23 = smov 8  }
  0x19   :  { %22 = dma.hbm_to_vmem [thread:$0]  %s675_s0, 256, %s17_s20, [#allocation4], %s625_s22, %s625_s22, %s626_s23  }
  0x1a   :  { %s627_s1 = smov [#allocation8]  }
  0x1b   :  { %s40_s26 = sshll.u32 %s627_s1, 4  ;;  %s41_s26 = int_to_ptr.vmem [resolvable:$true] %s40_s26 }
  0x1c   :  { %s583_s27 = scalar_lea.vmem %s41_s26, 4096  ;;  %p588_p11 = scmp.lt.s32.totalorder %s41_s26, %s41_s26 }
  0x1d   :  { %p584_p10 = scmp.ne.s32.totalorder %s41_s26, %s583_s27  ;;  %p589_p12 = scmp.lt.s32.totalorder %s583_s27, %s583_s27 }
  0x1f   :  { %p590_p13 = por %p589_p12, %p588_p11 }
  0x21   :  { %p591_p0 = pnand %p590_p13, %p584_p10 }
  0x23   :  { %594 = shalt.err (!%p591_p0)
}
  0x24   :  { %46 = dma.hbm_to_vmem [thread:$0]  %s677_s2, 4096, %s41_s26, [#allocation7], %s625_s22, %s625_s22, %s626_s23  }
  0x25   :  { %615 = dma.done.wait [#allocation4], 256  }
  0x26   :  { %616 = vsyncadd [#allocation4], 4294967040 }
  0x27   :  { %617 = dma.done.wait [#allocation7], 12288  }
  0x28   :  { %618 = vsyncadd [#allocation7], 4294955008  ;;  %v628_v0 = vmov 0.0   ;;  %v119_v1 = vld [vmem:[#allocation6 + $0x1e8] sm:$0xff]  ;;  %v118_v2 = vld [vmem:[#allocation6 + $0x1e0] sm:$0xff]  ;;  %s629_s0 = smov [#allocation9]  }
  0x29   :  { %186 = vmatprep.mubr.f32.mxu0 %v628_v0  ;;  %263 = vmatprep.mubr.f32.mxu1 %v628_v0  ;;  %v115_v3 = vld [vmem:[#allocation6 + $0x1c8] sm:$0xff]  ;;  %v114_v4 = vld [vmem:[#allocation6 + $0x1c0] sm:$0xff]  ;;  %v121_v10 = vld [vmem:[#allocation6 + $0x1f8] sm:$0xff]  ;;  %s435_s2 = sshll.u32 %s629_s0, 4  ;;  %s436_s2 = int_to_ptr.vmem [resolvable:$true] %s435_s2 }
  0x2a   :  { %122 = vmatprep.subr.mxu0 %v119_v1  ;;  %v111_v5 = vld [vmem:[#allocation6 + $0x1a8] sm:$0xff]  ;;  %v110_v6 = vld [vmem:[#allocation6 + $0x1a0] sm:$0xff]  ;;  %199 = vmatprep.subr.mxu1 %v121_v10  ;;  %v120_v12 = vld [vmem:[#allocation6 + $0x1f0] sm:$0xff]  ;;  %s595_s30 = scalar_lea.vmem %s436_s2, 256  ;;  %p600_p2 = scmp.lt.s32.totalorder %s436_s2, %s436_s2 }
  0x2b   :  { %123 = vmatpush1.msra.mxu0 %v118_v2  ;;  %v107_v7 = vld [vmem:[#allocation6 + $0x188] sm:$0xff]  ;;  %v106_v8 = vld [vmem:[#allocation6 + $0x180] sm:$0xff]  ;;  %v117_v13 = vld [vmem:[#allocation6 + $0x1d8] sm:$0xff]  ;;  %200 = vmatpush1.msra.mxu1 %v120_v12  ;;  %p596_p1 = scmp.ne.s32.totalorder %s436_s2, %s595_s30  ;;  %p601_p3 = scmp.lt.s32.totalorder %s595_s30, %s595_s30 }
  0x2c   :  { %124 = vmatprep.subr.mxu0 %v115_v3  ;;  %v103_v9 = vld [vmem:[#allocation6 + $0x168] sm:$0xff]  ;;  %v102_v11 = vld [vmem:[#allocation6 + $0x160] sm:$0xff]  ;;  %v116_v15 = vld [vmem:[#allocation6 + $0x1d0] sm:$0xff]  ;;  %201 = vmatprep.subr.mxu1 %v117_v13 }
  0x2d   :  { %125 = vmatpush1.msra.mxu0 %v114_v4  ;;  %v99_v14 = vld [vmem:[#allocation6 + $0x148] sm:$0xff]  ;;  %v98_v16 = vld [vmem:[#allocation6 + $0x140] sm:$0xff]  ;;  %v113_v17 = vld [vmem:[#allocation6 + $0x1b8] sm:$0xff]  ;;  %202 = vmatpush1.msra.mxu1 %v116_v15  ;;  %p602_p4 = por %p601_p3, %p600_p2 }
  0x2e   :  { %126 = vmatprep.subr.mxu0 %v111_v5  ;;  %v112_v18 = vld [vmem:[#allocation6 + $0x1b0] sm:$0xff]  ;;  %v95_v19 = vld [vmem:[#allocation6 + $0x128] sm:$0xff]  ;;  %v109_v20 = vld [vmem:[#allocation6 + $0x198] sm:$0xff]  ;;  %203 = vmatprep.subr.mxu1 %v113_v17 }
  0x2f   :  { %127 = vmatpush1.msra.mxu0 %v110_v6  ;;  %v94_v21 = vld [vmem:[#allocation6 + $0x120] sm:$0xff]  ;;  %v108_v22 = vld [vmem:[#allocation6 + $0x190] sm:$0xff]  ;;  %v91_v23 = vld [vmem:[#allocation6 + $0x108] sm:$0xff]  ;;  %204 = vmatpush1.msra.mxu1 %v112_v18  ;;  %p603_p5 = pnand %p602_p4, %p596_p1 }
  0x30   :  { %128 = vmatprep.subr.mxu0 %v107_v7  ;;  %v105_v24 = vld [vmem:[#allocation6 + $0x178] sm:$0xff]  ;;  %v90_v25 = vld [vmem:[#allocation6 + $0x100] sm:$0xff]  ;;  %205 = vmatprep.subr.mxu1 %v109_v20  ;;  %v104_v26 = vld [vmem:[#allocation6 + $0x170] sm:$0xff] }
  0x31   :  { %129 = vmatpush1.msra.mxu0 %v106_v8  ;;  %v87_v27 = vld [vmem:[#allocation6 + $0xe8] sm:$0xff]  ;;  %206 = vmatpush1.msra.mxu1 %v108_v22  ;;  %v101_v28 = vld [vmem:[#allocation6 + $0x158] sm:$0xff]  ;;  %v86_v29 = vld [vmem:[#allocation6 + $0xe0] sm:$0xff] }
  0x32   :  { %130 = vmatprep.subr.mxu0 %v103_v9  ;;  %207 = vmatprep.subr.mxu1 %v105_v24  ;;  %v100_v30 = vld [vmem:[#allocation6 + $0x150] sm:$0xff]  ;;  %v83_v31 = vld [vmem:[#allocation6 + $0xc8] sm:$0xff]  ;;  %v97_v32 = vld [vmem:[#allocation6 + $0x138] sm:$0xff] }
  0x33   :  { %131 = vmatpush1.msra.mxu0 %v102_v11  ;;  %208 = vmatpush1.msra.mxu1 %v104_v26  ;;  %v82_v33 = vld [vmem:[#allocation6 + $0xc0] sm:$0xff]  ;;  %v96_v34 = vld [vmem:[#allocation6 + $0x130] sm:$0xff]  ;;  %v79_v35 = vld [vmem:[#allocation6 + $0xa8] sm:$0xff] }
  0x34   :  { %132 = vmatprep.subr.mxu0 %v99_v14  ;;  %209 = vmatprep.subr.mxu1 %v101_v28  ;;  %v93_v36 = vld [vmem:[#allocation6 + $0x118] sm:$0xff]  ;;  %v78_v37 = vld [vmem:[#allocation6 + $0xa0] sm:$0xff]  ;;  %v92_v38 = vld [vmem:[#allocation6 + $0x110] sm:$0xff] }
  0x35   :  { %133 = vmatpush1.msra.mxu0 %v98_v16  ;;  %210 = vmatpush1.msra.mxu1 %v100_v30  ;;  %v75_v39 = vld [vmem:[#allocation6 + $0x88] sm:$0xff]  ;;  %v89_v40 = vld [vmem:[#allocation6 + $0xf8] sm:$0xff]  ;;  %v74_v41 = vld [vmem:[#allocation6 + $0x80] sm:$0xff] }
  0x36   :  { %134 = vmatprep.subr.mxu0 %v95_v19  ;;  %211 = vmatprep.subr.mxu1 %v97_v32  ;;  %v88_v42 = vld [vmem:[#allocation6 + $0xf0] sm:$0xff]  ;;  %v71_v43 = vld [vmem:[#allocation6 + $0x68] sm:$0xff]  ;;  %v85_v44 = vld [vmem:[#allocation6 + $0xd8] sm:$0xff] }
  0x37   :  { %135 = vmatpush1.msra.mxu0 %v94_v21  ;;  %212 = vmatpush1.msra.mxu1 %v96_v34  ;;  %v70_v45 = vld [vmem:[#allocation6 + $0x60] sm:$0xff]  ;;  %v84_v46 = vld [vmem:[#allocation6 + $0xd0] sm:$0xff]  ;;  %v67_v47 = vld [vmem:[#allocation6 + $0x48] sm:$0xff] }
  0x38   :  { %136 = vmatprep.subr.mxu0 %v91_v23  ;;  %213 = vmatprep.subr.mxu1 %v93_v36  ;;  %v81_v48 = vld [vmem:[#allocation6 + $0xb8] sm:$0xff]  ;;  %v66_v49 = vld [vmem:[#allocation6 + $0x40] sm:$0xff]  ;;  %v80_v50 = vld [vmem:[#allocation6 + $0xb0] sm:$0xff] }
  0x39   :  { %137 = vmatpush1.msra.mxu0 %v90_v25  ;;  %214 = vmatpush1.msra.mxu1 %v92_v38  ;;  %v63_v51 = vld [vmem:[#allocation6 + $0x28] sm:$0xff]  ;;  %v77_v52 = vld [vmem:[#allocation6 + $0x98] sm:$0xff]  ;;  %v62_v53 = vld [vmem:[#allocation6 + $0x20] sm:$0xff] }
  0x3a   :  { %138 = vmatprep.subr.mxu0 %v87_v27  ;;  %215 = vmatprep.subr.mxu1 %v89_v40  ;;  %v76_v54 = vld [vmem:[#allocation6 + $0x90] sm:$0xff]  ;;  %v59_v55 = vld [vmem:[#allocation6 + $0x8] sm:$0xff]  ;;  %v73_v56 = vld [vmem:[#allocation6 + $0x78] sm:$0xff] }
  0x3b   :  { %139 = vmatpush1.msra.mxu0 %v86_v29  ;;  %216 = vmatpush1.msra.mxu1 %v88_v42  ;;  %v58_v57 = vld [vmem:[#allocation6] sm:$0xff]  ;;  %v72_v58 = vld [vmem:[#allocation6 + $0x70] sm:$0xff]  ;;  %v69_v60 = vld [vmem:[#allocation6 + $0x58] sm:$0xff] }
  0x3c   :  { %140 = vmatprep.subr.mxu0 %v83_v31  ;;  %217 = vmatprep.subr.mxu1 %v85_v44  ;;  %v56_v59 = vld [vmem:[#allocation3] sm:$0xff]  ;;  %v65_v62 = vld [vmem:[#allocation6 + $0x38] sm:$0xff]  ;;  %v329_v8 = vld [vmem:[#allocation8 + $0xe8] sm:$0xff] }
  0x3d   :  { %141 = vmatpush1.msra.mxu0 %v82_v33  ;;  %218 = vmatpush1.msra.mxu1 %v84_v46  ;;  %v68_v61 = vld [vmem:[#allocation6 + $0x50] sm:$0xff]  ;;  %v331_v63 = vld [vmem:[#allocation8 + $0xf8] sm:$0xff]  ;;  %v313_v9 = vld [vmem:[#allocation8 + $0x68] sm:$0xff] }
  0x3e   :  { %142 = vmatprep.subr.mxu0 %v79_v35  ;;  %219 = vmatprep.subr.mxu1 %v81_v48  ;;  %v64_v1 = vld [vmem:[#allocation6 + $0x30] sm:$0xff]  ;;  %v315_v2 = vld [vmem:[#allocation8 + $0x78] sm:$0xff]  ;;  %v328_v10 = vld [vmem:[#allocation8 + $0xe0] sm:$0xff] }
  0x3f   :  { %143 = vmatpush1.msra.mxu0 %v78_v37  ;;  %220 = vmatpush1.msra.mxu1 %v80_v50  ;;  %v57_v3 = vld [vmem:[#allocation3 + $0x8] sm:$0xff]  ;;  %v60_v5 = vld [vmem:[#allocation6 + $0x10] sm:$0xff]  ;;  %v312_v11 = vld [vmem:[#allocation8 + $0x60] sm:$0xff] }
  0x40   :  { %144 = vmatprep.subr.mxu0 %v75_v39  ;;  %221 = vmatprep.subr.mxu1 %v77_v52  ;;  %v61_v4 = vld [vmem:[#allocation6 + $0x18] sm:$0xff]  ;;  %v330_v6 = vld [vmem:[#allocation8 + $0xf0] sm:$0xff]  ;;  %v325_v15 = vld [vmem:[#allocation8 + $0xc8] sm:$0xff] }
  0x41   :  { %145 = vmatpush1.msra.mxu0 %v74_v41  ;;  %222 = vmatpush1.msra.mxu1 %v76_v54  ;;  %v314_v7 = vld [vmem:[#allocation8 + $0x70] sm:$0xff]  ;;  %v327_v12 = vld [vmem:[#allocation8 + $0xd8] sm:$0xff]  ;;  %v309_v16 = vld [vmem:[#allocation8 + $0x48] sm:$0xff] }
  0x42   :  { %146 = vmatprep.subr.mxu0 %v71_v43  ;;  %223 = vmatprep.subr.mxu1 %v73_v56  ;;  %v311_v13 = vld [vmem:[#allocation8 + $0x58] sm:$0xff]  ;;  %v310_v14 = vld [vmem:[#allocation8 + $0x50] sm:$0xff]  ;;  %v324_v17 = vld [vmem:[#allocation8 + $0xc0] sm:$0xff] }
  0x43   :  { %147 = vmatpush1.msra.mxu0 %v70_v45  ;;  %224 = vmatpush1.msra.mxu1 %v72_v58  ;;  %v308_v18 = vld [vmem:[#allocation8 + $0x40] sm:$0xff]  ;;  %v323_v19 = vld [vmem:[#allocation8 + $0xb8] sm:$0xff]  ;;  %v322_v21 = vld [vmem:[#allocation8 + $0xb0] sm:$0xff] }
  0x44   :  { %148 = vmatprep.subr.mxu0 %v67_v47  ;;  %225 = vmatprep.subr.mxu1 %v69_v60  ;;  %v307_v20 = vld [vmem:[#allocation8 + $0x38] sm:$0xff]  ;;  %v306_v22 = vld [vmem:[#allocation8 + $0x30] sm:$0xff]  ;;  %v321_v23 = vld [vmem:[#allocation8 + $0xa8] sm:$0xff] }
  0x45   :  { %149 = vmatpush1.msra.mxu0 %v66_v49  ;;  %226 = vmatpush1.msra.mxu1 %v68_v61  ;;  %v305_v24 = vld [vmem:[#allocation8 + $0x28] sm:$0xff]  ;;  %v320_v25 = vld [vmem:[#allocation8 + $0xa0] sm:$0xff]  ;;  %v319_v27 = vld [vmem:[#allocation8 + $0x98] sm:$0xff] }
  0x46   :  { %150 = vmatprep.subr.mxu0 %v63_v51  ;;  %227 = vmatprep.subr.mxu1 %v65_v62  ;;  %v304_v26 = vld [vmem:[#allocation8 + $0x20] sm:$0xff]  ;;  %v303_v28 = vld [vmem:[#allocation8 + $0x18] sm:$0xff]  ;;  %v318_v29 = vld [vmem:[#allocation8 + $0x90] sm:$0xff] }
  0x47   :  { %151 = vmatpush1.msra.mxu0 %v62_v53  ;;  %228 = vmatpush1.msra.mxu1 %v64_v1  ;;  %v302_v30 = vld [vmem:[#allocation8 + $0x10] sm:$0xff]  ;;  %v317_v31 = vld [vmem:[#allocation8 + $0x88] sm:$0xff]  ;;  %v316_v33 = vld [vmem:[#allocation8 + $0x80] sm:$0xff] }
  0x48   :  { %152 = vmatprep.subr.mxu0 %v59_v55  ;;  %229 = vmatprep.subr.mxu1 %v61_v4  ;;  %v301_v32 = vld [vmem:[#allocation8 + $0x8] sm:$0xff]  ;;  %v300_v34 = vld [vmem:[#allocation8] sm:$0xff] }
  0x49   :  { %153 = vmatpush1.msra.mxu0 %v58_v57  ;;  %230 = vmatpush1.msra.mxu1 %v60_v5 }
  0x4a   :  { %187 = vmatmul.mubr.f32.vlgmr.msra.gmra.mxu0 %v56_v59  ;;  %448 = vmatprep.subr.mxu0 %v331_v63 }
  0x4b   :  { %192 = vmatprep.mubr.f32.mxu0 %v628_v0  ;;  %449 = vmatpush3.msra.mxu0 %v315_v2 }
  0x4c   :  { %450 = vmatprep.subr.mxu0 %v330_v6  ;;  %264 = vmatmul.mubr.f32.vlgmr.msra.gmra.mxu1 %v56_v59 }
  0x4d   :  { %451 = vmatpush3.msra.mxu0 %v314_v7  ;;  %269 = vmatprep.mubr.f32.mxu1 %v628_v0  ;;  %v326_v0 = vld [vmem:[#allocation8 + $0xd0] sm:$0xff] }
  0x4e   :  { %193 = vmatmul.mubr.f32.gmra.mxu0 %v57_v3  ;;  %486 = vmatprep.subr.mxu1 %v331_v63 }
  0x4f   :  { %452 = vmatprep.subr.mxu0 %v329_v8  ;;  %502 = vmatpush3.msra.mxu1 %v315_v2 }
  0x50   :  { %453 = vmatpush3.msra.mxu0 %v313_v9  ;;  %487 = vmatprep.subr.mxu1 %v330_v6 }
  0x51   :  { %270 = vmatmul.mubr.f32.gmra.mxu1 %v57_v3  ;;  %454 = vmatprep.subr.mxu0 %v328_v10 }
  0x52   :  { %503 = vmatpush3.msra.mxu1 %v314_v7  ;;  %455 = vmatpush3.msra.mxu0 %v312_v11 }
  0x53   :  { %488 = vmatprep.subr.mxu1 %v329_v8  ;;  %456 = vmatprep.subr.mxu0 %v327_v12 }
  0x54   :  { %504 = vmatpush3.msra.mxu1 %v313_v9  ;;  %457 = vmatpush3.msra.mxu0 %v311_v13 }
  0x55   :  { %489 = vmatprep.subr.mxu1 %v328_v10  ;;  %458 = vmatprep.subr.mxu0 %v326_v0 }
  0x56   :  { %505 = vmatpush3.msra.mxu1 %v312_v11  ;;  %459 = vmatpush3.msra.mxu0 %v310_v14 }
  0x57   :  { %490 = vmatprep.subr.mxu1 %v327_v12  ;;  %460 = vmatprep.subr.mxu0 %v325_v15 }
  0x58   :  { %506 = vmatpush3.msra.mxu1 %v311_v13  ;;  %461 = vmatpush3.msra.mxu0 %v309_v16 }
  0x59   :  { %491 = vmatprep.subr.mxu1 %v326_v0  ;;  %462 = vmatprep.subr.mxu0 %v324_v17 }
  0x5a   :  { %507 = vmatpush3.msra.mxu1 %v310_v14  ;;  %463 = vmatpush3.msra.mxu0 %v308_v18 }
  0x5b   :  { %492 = vmatprep.subr.mxu1 %v325_v15  ;;  %464 = vmatprep.subr.mxu0 %v323_v19 }
  0x5c   :  { %508 = vmatpush3.msra.mxu1 %v309_v16  ;;  %465 = vmatpush3.msra.mxu0 %v307_v20 }
  0x5d   :  { %493 = vmatprep.subr.mxu1 %v324_v17  ;;  %466 = vmatprep.subr.mxu0 %v322_v21 }
  0x5e   :  { %509 = vmatpush3.msra.mxu1 %v308_v18  ;;  %467 = vmatpush3.msra.mxu0 %v306_v22 }
  0x5f   :  { %494 = vmatprep.subr.mxu1 %v323_v19  ;;  %468 = vmatprep.subr.mxu0 %v321_v23 }
  0x60   :  { %510 = vmatpush3.msra.mxu1 %v307_v20  ;;  %469 = vmatpush3.msra.mxu0 %v305_v24 }
  0x61   :  { %495 = vmatprep.subr.mxu1 %v322_v21  ;;  %470 = vmatprep.subr.mxu0 %v320_v25 }
  0x62   :  { %511 = vmatpush3.msra.mxu1 %v306_v22  ;;  %471 = vmatpush3.msra.mxu0 %v304_v26 }
  0x63   :  { %496 = vmatprep.subr.mxu1 %v321_v23  ;;  %472 = vmatprep.subr.mxu0 %v319_v27 }
  0x64   :  { %512 = vmatpush3.msra.mxu1 %v305_v24  ;;  %473 = vmatpush3.msra.mxu0 %v303_v28 }
  0x65   :  { %497 = vmatprep.subr.mxu1 %v320_v25  ;;  %474 = vmatprep.subr.mxu0 %v318_v29 }
  0x66   :  { %513 = vmatpush3.msra.mxu1 %v304_v26  ;;  %475 = vmatpush3.msra.mxu0 %v302_v30 }
  0x67   :  { %498 = vmatprep.subr.mxu1 %v319_v27  ;;  %476 = vmatprep.subr.mxu0 %v317_v31 }
  0x68   :  { %514 = vmatpush3.msra.mxu1 %v303_v28  ;;  %477 = vmatpush3.msra.mxu0 %v301_v32 }
  0x69   :  { %499 = vmatprep.subr.mxu1 %v318_v29  ;;  %478 = vmatprep.subr.mxu0 %v316_v33 }
  0x6a   :  { %515 = vmatpush3.msra.mxu1 %v302_v30  ;;  %479 = vmatpush3.msra.mxu0 %v300_v34 }
  0x6b   :  { %500 = vmatprep.subr.mxu1 %v317_v31 }
  0x6c   :  { %516 = vmatpush3.msra.mxu1 %v301_v32 }
  0x6d   :  { %501 = vmatprep.subr.mxu1 %v316_v33 }
  0x6e   :  { %517 = vmatpush3.msra.mxu1 %v300_v34 }
 0x10a   :  { %v188_v35 = vpop.f32.mrf.mxu0 }
 0x10b   :  { %v280_v36 = vmul.f32 0.70710677, %v188_v35  ;;  %v276_v47 = vmul.f32 0.5, %v188_v35 }
 0x10c   :  { %v190_v37 = vpop.f32.mrf.mxu0  ;;  %v265_v43 = vpop.f32.mrf.mxu1 }
 0x10d   :  { %527 = verf.f32 %v280_v36  ;;  %v281_v38 = vmul.f32 0.70710677, %v190_v37  ;;  %v277_v49 = vmul.f32 0.5, %v190_v37 }
 0x10e   :  { %v194_v39 = vpop.f32.mrf.mxu0  ;;  %v267_v48 = vpop.f32.mrf.mxu1 }
 0x10f   :  { %529 = verf.f32 %v281_v38  ;;  %v282_v40 = vmul.f32 0.70710677, %v194_v39  ;;  %v278_v56 = vmul.f32 0.5, %v194_v39 }
 0x110   :  { %v196_v41 = vpop.f32.mrf.mxu0 }
 0x111   :  { %531 = verf.f32 %v282_v40  ;;  %v283_v42 = vmul.f32 0.70710677, %v196_v41  ;;  %v271_v57 = vpop.f32.mrf.mxu1  ;;  %v279_v58 = vmul.f32 0.5, %v196_v41 }
 0x113   :  { %533 = verf.f32 %v283_v42  ;;  %v273_v1 = vpop.f32.mrf.mxu1 }
 0x11a   :  { %v528_v44 = vpop.eup %527 }
 0x11b   :  { %v288_v45 = vadd.f32 1.0, %v528_v44 }
 0x11c   :  { %v530_v46 = vpop.eup %529 }
 0x11d   :  { %v289_v50 = vadd.f32 1.0, %v530_v46  ;;  %v292_v52 = vmul.f32 %v288_v45, %v276_v47 }
 0x11e   :  { %v532_v51 = vpop.eup %531 }
 0x11f   :  { %v293_v53 = vmul.f32 %v289_v50, %v277_v49  ;;  %v290_v54 = vadd.f32 1.0, %v532_v51  ;;  %v296_v61 = vmul.f32 %v292_v52, %v265_v43 }
 0x120   :  { %v534_v55 = vpop.eup %533 }
 0x121   :  { %v297_v59 = vmul.f32 %v293_v53, %v267_v48  ;;  %v291_v60 = vadd.f32 1.0, %v534_v55  ;;  %v294_v62 = vmul.f32 %v290_v54, %v278_v56 }
 0x123   :  { %v295_v63 = vmul.f32 %v291_v60, %v279_v58  ;;  %396 = vmatprep.mubr.f32.mxu0 %v297_v59  ;;  %v298_v3 = vmul.f32 %v294_v62, %v271_v57 }
 0x124   :  { %397 = vmatmul.mubr.f32.vlgmr.msra.gmra.mxu0 %v296_v61 }
 0x125   :  { %v299_v2 = vmul.f32 %v295_v63, %v273_v1 }
 0x127   :  { %401 = vmatprep.mubr.f32.mxu1 %v299_v2 }
 0x128   :  { %402 = vmatmul.mubr.f32.vlgmr.msra.gmra.mxu1 %v298_v3 }
 0x1e4   :  { %v480_v4 = vpop.f32.mrf.mxu0 }
 0x1e6   :  { %v481_v5 = vpop.f32.mrf.mxu0 }
 0x1e7   :  { %v482_v6 = vadd.f32 %v481_v5, %v480_v4 }
 0x1e8   :  { %v483_v7 = vpop.f32.mrf.mxu1 }
 0x1e9   :  { %428 = vst [vmem:[#allocation9] sm:$0xff] %v482_v6 }
 0x1ea   :  { %v484_v8 = vpop.f32.mrf.mxu1 }
 0x1eb   :  { %v485_v9 = vadd.f32 %v484_v8, %v483_v7 }
 0x1ed   :  { %429 = vst [vmem:[#allocation9 + $0x8] sm:$0xff] %v485_v9 }
 0x1ee   :  { %606 = shalt.err (!%p603_p5)
}
 0x1ef   :  { %441 = dma.vmem_to_hbm [thread:$0]  %s436_s2, 256, %s678_s3, [#allocation5], %s625_s22, %s625_s22, %s626_s23  }
 0x1f0   :  { %619 = dma.done.wait [#allocation5], 256  }
 0x1f1   :  { %620 = vsyncadd [#allocation5], 4294967040 }
 0x1f2   :  { %445 = vsyncpa [#allocation4], 1 }
 0x1f3   :  { %446 = vsyncpa [#allocation7], 1 }
 0x1f4   :  { %447 = vsyncpa [#allocation5], 1 }

</bundles_post_ra>
